<compile_context>
chip_gen: v6e
topology: v6e:2x2x1
jax: 0.10.0
libtpu: 0.0.40
codegen_flags: <defaults>
</compile_context>

<pallas_src>
import functools

import jax
import jax.numpy as jnp
import numpy as np
from jax.experimental import pallas as pl
from jax.experimental.pallas import tpu as pltpu


# ----------------------------- Pallas kernel ------------------------------- #
def _dualconv_kernel(x_ref, w_ref, o_ref, slab_ref, *, H, W):
    # x_ref    : (1, C1, L)    per-image input, H-padded + 1-elem flat guard,
    #                          L = (H+2)*W + 2, flattened spatial on lanes
    # w_ref    : (C2, 9*C1)    fused weight, tap-major ((kh,kw,cin) ordering)
    # o_ref    : (1, C2, H*W)  lane-dense output
    # slab_ref : VMEM scratch (9*C1, H*W) im2col slab
    C1 = x_ref.shape[1]
    HW = H * W

    # column-in-row index for every output position (lane-dense, shape (1, HW))
    col = jax.lax.broadcasted_iota(jnp.int32, (1, HW), 1) % W
    mask_l = (col != 0).astype(jnp.float32)        # kill wrap at w == 0     (kw == 0 taps)
    mask_r = (col != W - 1).astype(jnp.float32)    # kill wrap at w == W - 1 (kw == 2 taps)

    # build the (9*C1, HW) im2col slab: 9 static lane-shifted views of the image
    for t in range(9):
        kh, kw = t // 3, t % 3
        start = kh * W + kw                        # static offset into flat-padded image
        patch = x_ref[0, :, start:start + HW].astype(jnp.float32)   # (C1, HW)
        if kw == 0:
            patch = patch * mask_l
        elif kw == 2:
            patch = patch * mask_r
        slab_ref[t * C1:(t + 1) * C1, :] = patch

    # one MXU matmul: (C2, 9*C1) @ (9*C1, HW) -> (C2, HW), N-dim lane-dense
    out = jnp.dot(w_ref[...], slab_ref[...], preferred_element_type=jnp.float32)
    o_ref[0] = out.astype(o_ref.dtype)


# ----------------------------- wrapper (glue) ------------------------------ #
def dualconv_pallas(x_nchw, wg_grouped, wp, *, g=4, stride=1):
    # TODO(synk): stride > 1 not implemented (module default stride=1 is used here)
    assert stride == 1
    N, C1, H, W = x_nchw.shape
    C2 = wg_grouped.shape[0]
    in_per, out_per = C1 // g, C2 // g
    HW = H * W
    L = (H + 2) * W + 2

    # --- weight prep (exact, f32) ---
    # dense version of the grouped 3x3 weight (cross-group blocks are zero)
    wg_dense = jnp.zeros((C2, C1, 3, 3), jnp.float32)
    for co in range(C2):
        grp = co // out_per
        wg_dense = wg_dense.at[co, grp * in_per:(grp + 1) * in_per].set(
            wg_grouped[co].astype(jnp.float32))
    # fold the pointwise 1x1 conv into the center tap (conv is linear -> exact)
    w_fused = wg_dense.at[:, :, 1, 1].add(wp[:, :, 0, 0].astype(jnp.float32))
    # (C2, C1, 3, 3) -> (C2, 3, 3, C1) -> (C2, 9*C1), tap order (kh, kw, cin)
    w_mat = jnp.transpose(w_fused, (0, 2, 3, 1)).reshape(C2, 9 * C1)

    # --- input prep: pad H by 1 each side, flatten spatial, 1-elem flat guard ---
    xp = jnp.pad(x_nchw, ((0, 0), (0, 0), (1, 1), (0, 0)))          # (N, C1, H+2, W)
    xf = xp.reshape(N, C1, (H + 2) * W)
    xf = jnp.pad(xf, ((0, 0), (0, 0), (1, 1)))                      # (N, C1, L)

    kernel = functools.partial(_dualconv_kernel, H=H, W=W)

    out = pl.pallas_call(
        kernel,
        out_shape=jax.ShapeDtypeStruct((N, C2, HW), x_nchw.dtype),
        grid_spec=pltpu.PrefetchScalarGridSpec(
            num_scalar_prefetch=0,
            grid=(N,),
            in_specs=[
                pl.BlockSpec((1, C1, L), lambda n: (n, 0, 0)),
                pl.BlockSpec((C2, 9 * C1), lambda n: (0, 0)),
            ],
            out_specs=pl.BlockSpec((1, C2, HW), lambda n: (n, 0, 0)),
            scratch_shapes=[pltpu.VMEM((9 * C1, HW), jnp.float32)],
        ),
        compiler_params=pltpu.CompilerParams(
            dimension_semantics=("parallel",)),
    )(xf, w_mat)

    return out.reshape(N, C2, H, W)


# ------------------------- pure-JAX reference ------------------------------ #
def dualconv_ref(x, wg_grouped, wp, *, g=4):
    dn = ('NCHW', 'OIHW', 'NCHW')
    gc = jax.lax.conv_general_dilated(x, wg_grouped, (1, 1), ((1, 1), (1, 1)),
                                      dimension_numbers=dn,
                                      feature_group_count=g)
    pw = jax.lax.conv_general_dilated(x, wp, (1, 1), ((0, 0), (0, 0)),
                                      dimension_numbers=dn)
    return gc + pw


# ---------------------------------- main ----------------------------------- #
if __name__ == "__main__":
    # DualConvModule(in_channels=8, out_channels=8, stride=1, g=4)
    N, C1, H, W = 2, 8, 16, 16
    C2, g = 8, 4
    assert C1 % g == 0 and C2 % g == 0

    key = jax.random.PRNGKey(0)
    k1, k2, k3 = jax.random.split(key, 3)

    x = jax.random.normal(k1, (N, C1, H, W), jnp.float32)
    # gc : Conv2d(C1, C2, 3, stride=1, padding=1, groups=g, bias=False)
    wg = 0.1 * jax.random.normal(k2, (C2, C1 // g, 3, 3), jnp.float32)
    # pwc: Conv2d(C1, C2, 1, stride=1, bias=False)
    wp = 0.1 * jax.random.normal(k3, (C2, C1, 1, 1), jnp.float32)

    out = dualconv_pallas(x, wg, wp, g=g)
    out = jax.block_until_ready(out)

    ref = dualconv_ref(x, wg, wp, g=g)
    np.testing.assert_allclose(np.asarray(out), np.asarray(ref),
                               rtol=1e-4, atol=1e-4)
    print("KERNEL_OK")
</pallas_src>

<mosaic_0001>
module attributes {stable_mosaic.version = 11 : i64} {
  func.func @_dualconv_kernel(%arg0: i32, %arg1: memref<1x8x290xf32, #tpu.memory_space<vmem>>, %arg2: memref<8x72xf32, #tpu.memory_space<vmem>>, %arg3: memref<1x8x256xf32, #tpu.memory_space<vmem>>, %arg4: memref<72x256xf32, #tpu.memory_space<vmem>>) attributes {dimension_semantics = [#tpu.dimension_semantics<parallel>], iteration_bounds = array<i64: 2>, scalar_prefetch = 0 : i64, scratch_operands = 1 : i64, tpu.core_type = #tpu.core_type<tc>, window_params = [{transform_indices = @transform_0, window_bounds = array<i64: 1, 8, 290>}, {pipeline_mode = #tpu.pipeline_mode<synchronous>, transform_indices = @transform_1, window_bounds = array<i64: 8, 72>}, {transform_indices = @transform_2, window_bounds = array<i64: 1, 8, 256>}]} {
    %0 = tpu.iota {dimensions = array<i32: 1>} : vector<1x256xi32>
    %c16_i32 = arith.constant 16 : i32
    %c0_i32 = arith.constant 0 : i32
    %1 = arith.cmpi eq, %c16_i32, %c0_i32 : i32
    %c1_i32 = arith.constant 1 : i32
    %2 = arith.select %1, %c1_i32, %c16_i32 : i32
    %3 = vector.broadcast %2 : i32 to vector<1x256xi32>
    %4 = arith.remsi %0, %3 : vector<1x256xi32>
    %c0_i32_0 = arith.constant 0 : i32
    %5 = vector.broadcast %c0_i32_0 : i32 to vector<1x256xi32>
    %6 = arith.cmpi ne, %4, %5 : vector<1x256xi32>
    %c0_i32_1 = arith.constant 0 : i32
    %7 = vector.broadcast %c0_i32_1 : i32 to vector<1x256xi32>
    %8 = arith.cmpi slt, %4, %7 : vector<1x256xi32>
    %c0_i32_2 = arith.constant 0 : i32
    %9 = arith.cmpi slt, %2, %c0_i32_2 : i32
    %10 = vector.broadcast %9 : i1 to vector<1x256xi1>
    %11 = vector.broadcast %10 : vector<1x256xi1> to vector<1x256xi1>
    %12 = arith.xori %8, %11 : vector<1x256xi1>
    %13 = arith.andi %12, %6 : vector<1x256xi1>
    %14 = vector.broadcast %2 : i32 to vector<1x256xi32>
    %15 = arith.addi %4, %14 : vector<1x256xi32>
    %16 = arith.select %13, %15, %4 : vector<1x256xi1>, vector<1x256xi32>
    %c0_i32_3 = arith.constant 0 : i32
    %17 = vector.broadcast %c0_i32_3 : i32 to vector<1x256xi32>
    %18 = arith.cmpi ne, %16, %17 : vector<1x256xi32>
    %19 = arith.extui %18 : vector<1x256xi1> to vector<1x256xi32>
    %20 = arith.sitofp %19 : vector<1x256xi32> to vector<1x256xf32>
    %c15_i32 = arith.constant 15 : i32
    %21 = vector.broadcast %c15_i32 : i32 to vector<1x256xi32>
    %22 = arith.cmpi ne, %16, %21 : vector<1x256xi32>
    %23 = arith.extui %22 : vector<1x256xi1> to vector<1x256xi32>
    %24 = arith.sitofp %23 : vector<1x256xi32> to vector<1x256xf32>
    %c0 = arith.constant 0 : index
    %c0_4 = arith.constant 0 : index
    %c0_5 = arith.constant 0 : index
    %25 = vector.load %arg1[%c0, %c0_4, %c0_5] : memref<1x8x290xf32, #tpu.memory_space<vmem>>, vector<1x8x256xf32>
    %26 = vector.shape_cast %25 : vector<1x8x256xf32> to vector<8x256xf32>
    %27 = vector.broadcast %20 : vector<1x256xf32> to vector<8x256xf32>
    %28 = arith.mulf %26, %27 : vector<8x256xf32>
    %c0_6 = arith.constant 0 : index
    %c0_7 = arith.constant 0 : index
    %29 = vector.load %arg4[%c0_6, %c0_7] : memref<72x256xf32, #tpu.memory_space<vmem>>, vector<8x256xf32>
    tpu.vector_store %arg4[%c0_6, %c0_7], %28 {strides = array<i32>} : memref<72x256xf32, #tpu.memory_space<vmem>>, vector<8x256xf32>,
    %c0_8 = arith.constant 0 : index
    %c0_9 = arith.constant 0 : index
    %c1 = arith.constant 1 : index
    %30 = vector.load %arg1[%c0_8, %c0_9, %c1] : memref<1x8x290xf32, #tpu.memory_space<vmem>>, vector<1x8x256xf32>
    %31 = vector.shape_cast %30 : vector<1x8x256xf32> to vector<8x256xf32>
    %c8 = arith.constant 8 : index
    %c0_10 = arith.constant 0 : index
    %32 = vector.load %arg4[%c8, %c0_10] : memref<72x256xf32, #tpu.memory_space<vmem>>, vector<8x256xf32>
    tpu.vector_store %arg4[%c8, %c0_10], %31 {strides = array<i32>} : memref<72x256xf32, #tpu.memory_space<vmem>>, vector<8x256xf32>,
    %c0_11 = arith.constant 0 : index
    %c0_12 = arith.constant 0 : index
    %c2 = arith.constant 2 : index
    %33 = vector.load %arg1[%c0_11, %c0_12, %c2] : memref<1x8x290xf32, #tpu.memory_space<vmem>>, vector<1x8x256xf32>
    %34 = vector.shape_cast %33 : vector<1x8x256xf32> to vector<8x256xf32>
    %35 = vector.broadcast %24 : vector<1x256xf32> to vector<8x256xf32>
    %36 = arith.mulf %34, %35 : vector<8x256xf32>
    %c16 = arith.constant 16 : index
    %c0_13 = arith.constant 0 : index
    %37 = vector.load %arg4[%c16, %c0_13] : memref<72x256xf32, #tpu.memory_space<vmem>>, vector<8x256xf32>
    tpu.vector_store %arg4[%c16, %c0_13], %36 {strides = array<i32>} : memref<72x256xf32, #tpu.memory_space<vmem>>, vector<8x256xf32>,
    %c0_14 = arith.constant 0 : index
    %c0_15 = arith.constant 0 : index
    %c16_16 = arith.constant 16 : index
    %38 = vector.load %arg1[%c0_14, %c0_15, %c16_16] : memref<1x8x290xf32, #tpu.memory_space<vmem>>, vector<1x8x256xf32>
    %39 = vector.shape_cast %38 : vector<1x8x256xf32> to vector<8x256xf32>
    %40 = vector.broadcast %20 : vector<1x256xf32> to vector<8x256xf32>
    %41 = arith.mulf %39, %40 : vector<8x256xf32>
    %c24 = arith.constant 24 : index
    %c0_17 = arith.constant 0 : index
    %42 = vector.load %arg4[%c24, %c0_17] : memref<72x256xf32, #tpu.memory_space<vmem>>, vector<8x256xf32>
    tpu.vector_store %arg4[%c24, %c0_17], %41 {strides = array<i32>} : memref<72x256xf32, #tpu.memory_space<vmem>>, vector<8x256xf32>,
    %c0_18 = arith.constant 0 : index
    %c0_19 = arith.constant 0 : index
    %c17 = arith.constant 17 : index
    %43 = vector.load %arg1[%c0_18, %c0_19, %c17] : memref<1x8x290xf32, #tpu.memory_space<vmem>>, vector<1x8x256xf32>
    %44 = vector.shape_cast %43 : vector<1x8x256xf32> to vector<8x256xf32>
    %c32 = arith.constant 32 : index
    %c0_20 = arith.constant 0 : index
    %45 = vector.load %arg4[%c32, %c0_20] : memref<72x256xf32, #tpu.memory_space<vmem>>, vector<8x256xf32>
    tpu.vector_store %arg4[%c32, %c0_20], %44 {strides = array<i32>} : memref<72x256xf32, #tpu.memory_space<vmem>>, vector<8x256xf32>,
    %c0_21 = arith.constant 0 : index
    %c0_22 = arith.constant 0 : index
    %c18 = arith.constant 18 : index
    %46 = vector.load %arg1[%c0_21, %c0_22, %c18] : memref<1x8x290xf32, #tpu.memory_space<vmem>>, vector<1x8x256xf32>
    %47 = vector.shape_cast %46 : vector<1x8x256xf32> to vector<8x256xf32>
    %48 = vector.broadcast %24 : vector<1x256xf32> to vector<8x256xf32>
    %49 = arith.mulf %47, %48 : vector<8x256xf32>
    %c40 = arith.constant 40 : index
    %c0_23 = arith.constant 0 : index
    %50 = vector.load %arg4[%c40, %c0_23] : memref<72x256xf32, #tpu.memory_space<vmem>>, vector<8x256xf32>
    tpu.vector_store %arg4[%c40, %c0_23], %49 {strides = array<i32>} : memref<72x256xf32, #tpu.memory_space<vmem>>, vector<8x256xf32>,
    %c0_24 = arith.constant 0 : index
    %c0_25 = arith.constant 0 : index
    %c32_26 = arith.constant 32 : index
    %51 = vector.load %arg1[%c0_24, %c0_25, %c32_26] : memref<1x8x290xf32, #tpu.memory_space<vmem>>, vector<1x8x256xf32>
    %52 = vector.shape_cast %51 : vector<1x8x256xf32> to vector<8x256xf32>
    %53 = vector.broadcast %20 : vector<1x256xf32> to vector<8x256xf32>
    %54 = arith.mulf %52, %53 : vector<8x256xf32>
    %c48 = arith.constant 48 : index
    %c0_27 = arith.constant 0 : index
    %55 = vector.load %arg4[%c48, %c0_27] : memref<72x256xf32, #tpu.memory_space<vmem>>, vector<8x256xf32>
    tpu.vector_store %arg4[%c48, %c0_27], %54 {strides = array<i32>} : memref<72x256xf32, #tpu.memory_space<vmem>>, vector<8x256xf32>,
    %c0_28 = arith.constant 0 : index
    %c0_29 = arith.constant 0 : index
    %c33 = arith.constant 33 : index
    %56 = vector.load %arg1[%c0_28, %c0_29, %c33] : memref<1x8x290xf32, #tpu.memory_space<vmem>>, vector<1x8x256xf32>
    %57 = vector.shape_cast %56 : vector<1x8x256xf32> to vector<8x256xf32>
    %c56 = arith.constant 56 : index
    %c0_30 = arith.constant 0 : index
    %58 = vector.load %arg4[%c56, %c0_30] : memref<72x256xf32, #tpu.memory_space<vmem>>, vector<8x256xf32>
    tpu.vector_store %arg4[%c56, %c0_30], %57 {strides = array<i32>} : memref<72x256xf32, #tpu.memory_space<vmem>>, vector<8x256xf32>,
    %c0_31 = arith.constant 0 : index
    %c0_32 = arith.constant 0 : index
    %c34 = arith.constant 34 : index
    %59 = vector.load %arg1[%c0_31, %c0_32, %c34] : memref<1x8x290xf32, #tpu.memory_space<vmem>>, vector<1x8x256xf32>
    %60 = vector.shape_cast %59 : vector<1x8x256xf32> to vector<8x256xf32>
    %61 = vector.broadcast %24 : vector<1x256xf32> to vector<8x256xf32>
    %62 = arith.mulf %60, %61 : vector<8x256xf32>
    %c64 = arith.constant 64 : index
    %c0_33 = arith.constant 0 : index
    %63 = vector.load %arg4[%c64, %c0_33] : memref<72x256xf32, #tpu.memory_space<vmem>>, vector<8x256xf32>
    tpu.vector_store %arg4[%c64, %c0_33], %62 {strides = array<i32>} : memref<72x256xf32, #tpu.memory_space<vmem>>, vector<8x256xf32>,
    %c0_34 = arith.constant 0 : index
    %c0_35 = arith.constant 0 : index
    %64 = vector.load %arg2[%c0_34, %c0_35] : memref<8x72xf32, #tpu.memory_space<vmem>>, vector<8x72xf32>
    %c0_36 = arith.constant 0 : index
    %c0_37 = arith.constant 0 : index
    %65 = vector.load %arg4[%c0_36, %c0_37] : memref<72x256xf32, #tpu.memory_space<vmem>>, vector<72x256xf32>
    %cst = arith.constant dense<0.000000e+00> : vector<8x256xf32>
    %66 = tpu.matmul %64, %65, %cst {dimension_numbers = #tpu.dot_dimension_numbers<[1], [0], [0], [1], [0, 0, 1, 1], [], []>} : vector<8x72xf32>, vector<72x256xf32>, vector<8x256xf32> -> vector<8x256xf32>
    %c0_38 = arith.constant 0 : index
    %c0_39 = arith.constant 0 : index
    %c0_40 = arith.constant 0 : index
    %67 = vector.load %arg3[%c0_38, %c0_39, %c0_40] : memref<1x8x256xf32, #tpu.memory_space<vmem>>, vector<1x8x256xf32>
    %68 = vector.shape_cast %67 : vector<1x8x256xf32> to vector<8x256xf32>
    %69 = vector.shape_cast %66 : vector<8x256xf32> to vector<1x8x256xf32>
    tpu.vector_store %arg3[%c0_38, %c0_39, %c0_40], %69 {strides = array<i32>} : memref<1x8x256xf32, #tpu.memory_space<vmem>>, vector<1x8x256xf32>,
    return
  }
  func.func @transform_0(%arg0: i32) -> (i32, i32, i32) {
    %c0_i32 = arith.constant 0 : i32
    %c0_i32_0 = arith.constant 0 : i32
    %c0_i32_1 = arith.constant 0 : i32
    return %arg0, %c0_i32, %c0_i32_0 : i32, i32, i32
  }
  func.func @transform_1(%arg0: i32) -> (i32, i32) {
    %c0_i32 = arith.constant 0 : i32
    %c0_i32_0 = arith.constant 0 : i32
    %c0_i32_1 = arith.constant 0 : i32
    return %c0_i32, %c0_i32_0 : i32, i32
  }
  func.func @transform_2(%arg0: i32) -> (i32, i32, i32) {
    %c0_i32 = arith.constant 0 : i32
    %c0_i32_0 = arith.constant 0 : i32
    %c0_i32_1 = arith.constant 0 : i32
    return %arg0, %c0_i32, %c0_i32_0 : i32, i32, i32
  }
}

</mosaic_0001>

<bundles_post_ra>
// kernel: tpu_custom_call.1
= control target key start
LH: loop header
LB: loop body
LE: loop exit
PB: predicated region body
PF: predicated region fallthrough
CT: control target
= control target key end

     0   :  { %7 = vsyncpa [#allocation4], 0  ;;  %s1126_s0 = inlined_call_operand.hbm [shape: f32[2,8,290], index: 0, kind: input, shape index: {}]   ;;  %s1127_s1 = inlined_call_operand.hbm [shape: f32[8,72], index: 1, kind: input, shape index: {}]   ;;  %s1128_s2 = inlined_call_operand.hbm [shape: f32[2,8,256], index: 2, kind: output, shape index: {}]  }
   0x1   :  { %9 = vsyncpa [#allocation4 + $0x1], 0 }
   0x2   :  { %10 = vsyncpa [#allocation7], 0 }
   0x3   :  { %11 = vsyncpa [#allocation5], 0 }
   0x4   :  { %13 = vsyncpa [#allocation5 + $0x1], 0  ;;  %s899_s9 = smov 0   ;;  %s901_s10 = smov 0  }
   0x5   :  { %s903_s11 = smov 0   ;;  %s905_s12 = smov 0  }
   0x6 LB: > { %s920_s13 = sadd.s32 4294967295, %s865_s12   ;;  %s625_s14 = sadd.s32 4294967294, %s865_s12   ;;  %s865_s12 = sphi %s905_s12, %s1151_s12   ;;  %s861_s11 = sphi %s903_s11, %s1150_s11   ;;  %s857_s10 = sphi %s901_s10, %s1149_s10   ;;  %s853_s9 = sphi %s899_s9, %s1148_s9  }
   0x7   : > { %p39_p0 = scmp.ne.s32.totalorder %s857_s10, %s853_s9  ;;  %p1129_p1 = scmp.eq.s32.totalorder %s920_s13, 0 }
   0x8   : > { %p90_p3 = scmp.eq.s32.totalorder %s625_s14, 1  ;;  %p626_p5 = scmp.ge.s32.totalorder %s865_s12, 1 }
   0x9   : > { %p929_p4 = por %p1129_p1, %p39_p0  ;;  %p97_p7 = scmp.lt.s32.totalorder %s865_s12, 3 }
   0xa   : > { %p934_p6 = por %p90_p3, %p39_p0  ;;  %s867_s18 = smov [#allocation6]  }
   0xb   : > { %s1133_s15 = scalar_select %p929_p4, 1, 0 }
   0xc   : > { %s1134_s16 = scalar_select %p934_p6, 1, 0 }
   0xd   : > { %p939_p8 = pnand %p626_p5, %p97_p7  ;;  %s110_s19 = sshll.u32 %s867_s18, 4  ;;  %s111_s19 = int_to_ptr.vmem [resolvable:$true] %s110_s19 }
   0xe   : > { %s947_s20 = sadd.s32 1, %s865_s12   ;;  %s26_s24 = sadd.s32 1, %s861_s11 }
   0xf   : > { %s1135_s17 = scalar_select %p939_p8, 1, 0 }
  0x10   : > { %p655_p10 = pneg %p939_p8  ;;  %s23_s22 = ssub.s32 %s865_s12, %s947_s20 }
  0x11   : > { %p957_p12 = scmp.eq.s32.totalorder %s23_s22, 0  ;;  %p33_p13 = scmp.ne.s32.totalorder %s861_s11, %s857_s10 }
  0x12   : > { %p951_p11 = pnand %p655_p10, %p1129_p1  ;;  %s754_s25 = scalar_lea.vmem %s111_s19, 128 }
  0x13   : > { %p755_p3 = scmp.ne.s32.totalorder %s111_s19, %s754_s25  ;;  %p762_p9 = scmp.lt.s32.totalorder %s111_s19, %s111_s19 }
  0x14   : > { %p745_p0 = pneg %p951_p11  ;;  %p763_p2 = scmp.lt.s32.totalorder %s754_s25, %s754_s25 }
  0x16   : > { %p757_p5 = pnand %p755_p3, %p745_p0  ;;  %p764_p10 = por %p763_p2, %p762_p9 }
  0x18   : > { %p758_p7 = pneg %p757_p5 }
  0x1a   : > { %p765_p1 = pnand %p764_p10, %p758_p7 }
  0x1c   : > { %768 = shalt.err (!%p765_p1)
}
  0x1d   : > { %658 = dma.hbm_to_vmem [thread:$0]  (!%p951_p11), %s1127_s1, 128, %s111_s19, [#allocation7]  }
  0x1e   : > { %s974_s28 = scalar_select %p957_p12, %s861_s11, %s26_s24  }
  0x1f   : > { %p34_p1 = scmp.eq.s32.totalorder %s865_s12, 0  ;;  %p1138_p2 = scmp.eq.s32.totalorder %s920_s13, 1 }
  0x20   : > { %p668_p0 = scmp.lt.s32.totalorder %s865_s12, 2  ;;  %s121_s30 = sand.u32 1, %s861_s11  }
  0x21   : > { %p982_p9 = por %p1138_p2, %p33_p13  ;;  %p35_p3 = por %p34_p1, %p33_p13 }
  0x22   : > { %s644_s3 = smul.u32 24, %s121_s30  ;;  %s122_s19 = scalar_lea.sflag [#allocation4], %s121_s30 }
  0x23   : > { %s1139_s29 = scalar_select %p982_p9, 1, 0 }
  0x24   : > { %s645_s4 = smul.u32 384, %s865_s12  ;;  %p992_p5 = pnand %p668_p0, %p35_p3 }
  0x25   : > { %s125_s14 = scalar_lea.vmem [#allocation3], %s644_s3  ;;  %s774_s24 = scalar_lea.hbm %s1126_s0, 768 }
  0x26   : > { %s999_s8 = scalar_lea.hbm %s1126_s0, %s645_s4  ;;  %s133_s18 = sshll.u32 %s125_s14, 4  ;;  %s134_s18 = int_to_ptr.vmem [resolvable:$true] %s133_s18 }
  0x27   : > { %s769_s21 = scalar_lea.hbm %s999_s8, 384  ;;  %p771_p12 = pneg %p992_p5 }
  0x28   : > { %p770_p11 = scmp.ne.s32.totalorder %s999_s8, %s769_s21  ;;  %p775_p10 = scmp.lt.s32.totalorder %s999_s8, %s1126_s0 }
  0x29   : > { %p776_p1 = scmp.lt.s32.totalorder %s774_s24, %s769_s21 }
  0x2a   : > { %p772_p13 = pnand %p771_p12, %p770_p11 }
  0x2b   : > { %p777_p2 = por %p776_p1, %p775_p10 }
  0x2c   : > { %p773_p7 = pneg %p772_p13 }
  0x2e   : > { %p778_p0 = pnand %p777_p2, %p773_p7 }
  0x30   : > { %781 = shalt.err (!%p778_p0)
}
  0x31   : > { %s782_s27 = scalar_lea.vmem %s134_s18, 384  ;;  %s868_s30 = smov [#allocation3]  }
  0x32   : > { %p783_p3 = scmp.ne.s32.totalorder %s134_s18, %s782_s27  ;;  %s787_s3 = sshll.u32 %s868_s30, 4  ;;  %s788_s3 = int_to_ptr.vmem [resolvable:$false] %s787_s3 }
  0x33   : > { %s789_s4 = scalar_lea.vmem %s788_s3, 768  ;;  %p790_p11 = scmp.lt.s32.totalorder %s134_s18, %s788_s3 }
  0x34   : > { %p785_p6 = pnand %p783_p3, %p771_p12  ;;  %p791_p13 = scmp.lt.s32.totalorder %s789_s4, %s782_s27 }
  0x36   : > { %p786_p9 = pneg %p785_p6  ;;  %p792_p4 = por %p791_p13, %p790_p11 }
  0x38   : > { %p793_p8 = pnand %p792_p4, %p786_p9 }
  0x3a   : > { %796 = shalt.err (!%p793_p8)
}
  0x3b   : > { %662 = dma.hbm_to_vmem [thread:$0]  (!%p992_p5), %s999_s8, 384, %s134_s18, %s122_s19  }
  0x3c   : > { %p1141_p7 = scmp.ne.s32.totalorder %s1135_s17, 0 }
  0x3d   : > { %s1018_s6 = sand.u32 (!%p1141_p7), 1, %s857_s10   ;;  %p1142_p6 = scmp.ne.s32.totalorder (!%p1141_p7), %s1133_s15, 0 }
  0x3e   : > { %142 = sbr.rel (%p1141_p7) target bundleno = 560 (0x230), region = 28  ;;  %s145_s14 = scalar_lea.sflag (!%p1141_p7), [#allocation4], %s1018_s6 }
  0x3f   : > { %s646_s7 = smul.u32 (!%p1141_p7), 24, %s1018_s6 }
  0x41   : > { %s1022_s21 = scalar_lea.vmem (!%p1141_p7), [#allocation3], %s646_s7 }
  0x43   : > { %840 = dma.done.wait (%p1142_p6), %s145_s14, 384  }
  0x44   : > { %842 = vsyncadd (%p1142_p6), %s145_s14, 4294966912  ;;  %v173_v0 = vlaneseq  ;;  %p1143_p4 = scmp.eq.s32.totalorder %s920_s13, 0 }
  0x46   : > { %844 = dma.done.wait (%p1143_p4), [#allocation7], 128   ;;  %p1144_p8 = pmov %p1143_p4 }
  0x47   : > { %v869_v1 = vmov 0.0   ;;  %v174_v2 = vand.u32 127, %v173_v0  ;;  %s870_s15 = smov 18   ;;  %s871_s17 = smov 34   ;;  %v1039_v12 = vld [vmem:[%s1022_s21 + $0x10] sm:$0xff]  ;;  %v1043_v13 = vld [vmem:[%s1022_s21 + $0x8] sm:$0xff] }
  0x48   : > { %846 = vsyncadd (%p1144_p8), [#allocation7], 4294967168  ;;  %521 = vmatprep.mubr.f32.mxu0 %v869_v1  ;;  %s872_s5 = smov 16   ;;  %s873_s8 = smov 32   ;;  %v1048_v14 = vld [vmem:[%s1022_s21] sm:$0xff]  ;;  %vm410_vm4 = vcmask 277504  }
  0x49   : > { %v175_v3 = vadd.s32 128, %v174_v2  ;;  %v180_v4 = vand.u32 15, %v174_v2  ;;  %s874_s18 = smov 2   ;;  %s875_s19 = smov 95   ;;  %vm360_vm5 = vcmask 261120   ;;  %vm329_vm6 = vcmask 146432  }
  0x4a   : > { %s876_s22 = smov 111   ;;  %s877_s23 = smov 110   ;;  %vm279_vm7 = vcmask 130048   ;;  %vm246_vm8 = vcmask 15360   ;;  %vm427_vm9 = vcmask 769024   ;;  %vm396_vm10 = vcmask 777216  }
  0x4b   : > { %v187_v5 = vand.u32 15, %v175_v3  ;;  %vm206_vm0 = vcmp.ne.s32.totalorder %v180_v4, 15  ;;  %vm200_vm1 = vcmp.ne.s32.totalorder %v180_v4, 0  ;;  %s878_s24 = smov 94   ;;  %s879_s25 = smov 96   ;;  %vm377_vm11 = vcmask 785408  }
  0x4c   : > { %v635_v6 = vsel %vm206_vm0, 1.0, %v869_v1  ;;  %v1032_v8 = vsel %vm200_vm1, 1.0, %v869_v1  ;;  %s880_s26 = smov 112   ;;  %s881_s27 = smov 126   ;;  %vm346_vm12 = vcmask 900096   ;;  %vm315_vm13 = vcmask 908288  }
  0x4d   : > { %vm207_vm2 = vcmp.ne.s32.totalorder %v187_v5, 15  ;;  %vm201_vm3 = vcmp.ne.s32.totalorder %v187_v5, 0  ;;  %s882_s30 = smov 127   ;;  %vm296_vm14 = vcmask 916480   ;;  %vm263_vm15 = vcmask 1031168   ;;  %s632_s3 = sshll.u32 %s1018_s6, 4 }
  0x4e   : > { %v636_v7 = vsel %vm207_vm2, 1.0, %v869_v1  ;;  %v1034_v9 = vsel %vm201_vm3, 1.0, %v869_v1  ;;  %vm230_vm0 = vcmask 1039360   ;;  %vm453_vm1 = vcmask 588800   ;;  %s172_s4 = scalar_lea.vmem [#allocation8], %s632_s3  ;;  %s643_s14 = sshll.u32 %s920_s13, 8 }
  0x4f   : > { %v728_v10 = vpack.i.bf16 %v636_v7, %v635_v6  ;;  %v733_v11 = vpack.i.bf16 %v1034_v9, %v1032_v8  ;;  %s545_s7 = sshll.u32 %s172_s4, 4  ;;  %p1145_p5 = scmp.ne.s32.totalorder %s1139_s29, 0  ;;  %s1086_s7 = int_to_ptr.vmem [resolvable:$true] %s545_s7 }
  0x50   : > { %s883_s13 = smov [#allocation8]  }
  0x51   : > { %729 = vrot.lane.b32.xlu1 %v728_v10, %s870_s15  ;;  %719 = vrot.lane.b32.xlu0 %v728_v10, %s871_s17  ;;  %s543_s17 = scalar_lea.hbm %s1128_s2, %s643_s14 }
  0x55   : > { %734 = vrot.lane.b32.xlu1 %v733_v11, %s872_s5  ;;  %724 = vrot.lane.b32.xlu0 %v733_v11, %s873_s8  ;;  %s531_s5 = scalar_lea.sflag [#allocation5], %s1018_s6  ;;  %s797_s8 = scalar_lea.vmem %s1086_s7, 256 }
  0x56   : > { %p798_p9 = scmp.ne.s32.totalorder %s1086_s7, %s797_s8 }
  0x58   : > { %p799_p12 = pnand %p798_p9, %p1145_p5 }
  0x59   : > { %739 = vrot.lane.b32.xlu0 %v728_v10, %s874_s18  ;;  %394 = vrot.lane.b32.xlu1 %v1039_v12, %s875_s19  ;;  %s801_s18 = sshll.u32 %s883_s13, 4  ;;  %s802_s18 = int_to_ptr.vmem [resolvable:$false] %s801_s18 }
  0x5a   : > { %p800_p10 = pneg %p799_p12  ;;  %p804_p1 = scmp.lt.s32.totalorder %s1086_s7, %s802_s18 }
  0x5d   : > { %392 = vrot.lane.b32.xlu0 %v1043_v13, %s875_s19  ;;  %311 = vrot.lane.b32.xlu1 %v1043_v13, %s876_s22 }
  0x61   : > { %390 = vrot.lane.b32.xlu0 %v1048_v14, %s875_s19  ;;  %309 = vrot.lane.b32.xlu1 %v1048_v14, %s876_s22  ;;  %s803_s19 = scalar_lea.vmem %s802_s18, 512 }
  0x62   : > { %p805_p2 = scmp.lt.s32.totalorder %s803_s19, %s797_s8 }
  0x64   : > { %p806_p0 = por %p805_p2, %p804_p1 }
  0x65   : > { %313 = vrot.lane.b32.xlu0 %v1039_v12, %s876_s22 }
  0x66   : > { %p807_p3 = pnand %p806_p0, %p800_p10 }
  0xc3   : > { %v730_v15 = vpop.permute.xlu1 %729  ;;  %v720_v16 = vpop.permute.xlu0 %719 }
  0xc4   : > { %v731_v17 = vunpack.i.l.bf16 %v730_v15  ;;  %v721_v18 = vunpack.i.l.bf16 %v720_v16  ;;  %v732_v25 = vunpack.i.h.bf16 %v730_v15  ;;  %v722_v26 = vunpack.i.h.bf16 %v720_v16 }
  0xc6   : > { %v334_v19 = vmul.f32 %v731_v17, %v1048_v14  ;;  %v415_v20 = vmul.f32 %v721_v18, %v1048_v14  ;;  %v336_v30 = vmul.f32 %v732_v25, %v1039_v12  ;;  %v417_v31 = vmul.f32 %v722_v26, %v1039_v12 }
  0xc7   : > { %v735_v21 = vpop.permute.xlu1 %734  ;;  %v725_v22 = vpop.permute.xlu0 %724  ;;  %v411_v37 = vsel %vm410_vm4, %v721_v18, %v722_v26  ;;  %v330_v41 = vsel %vm329_vm6, %v731_v17, %v732_v25 }
  0xc8   : > { %v736_v23 = vunpack.i.l.bf16 %v735_v21  ;;  %v726_v24 = vunpack.i.l.bf16 %v725_v22  ;;  %340 = vrot.lane.b32.xlu0 %v334_v19, %s877_s23  ;;  %421 = vrot.lane.b32.xlu1 %v415_v20, %s878_s24  ;;  %v737_v32 = vunpack.i.h.bf16 %v735_v21  ;;  %v727_v33 = vunpack.i.h.bf16 %v725_v22 }
  0xc9   : > { %v416_v39 = vmul.f32 %v411_v37, %v1043_v13  ;;  %v335_v44 = vmul.f32 %v1043_v13, %v330_v41 }
  0xca   : > { %v284_v27 = vmul.f32 %v736_v23, %v1048_v14  ;;  %v365_v28 = vmul.f32 %v726_v24, %v1048_v14  ;;  %v286_v35 = vmul.f32 %v737_v32, %v1039_v12  ;;  %v367_v36 = vmul.f32 %v727_v33, %v1039_v12 }
  0xcb   : > { %v740_v29 = vpop.permute.xlu0 %739  ;;  %v361_v40 = vsel %vm360_vm5, %v726_v24, %v727_v33  ;;  %v280_v45 = vsel %vm279_vm7, %v736_v23, %v737_v32  ;;  %v395_v50 = vpop.permute.xlu1 %394  ;;  %v434_v32 = vld [vmem:[#allocation6] sm:$0xff] }
  0xcc   : > { %371 = vrot.lane.b32.xlu1 %v365_v28, %s879_s25  ;;  %290 = vrot.lane.b32.xlu0 %v284_v27, %s880_s26  ;;  %v742_v34 = vunpack.i.h.bf16 %v740_v29  ;;  %v741_v42 = vunpack.i.l.bf16 %v740_v29  ;;  %v366_v43 = vmul.f32 %v1043_v13, %v361_v40  ;;  %v285_v47 = vmul.f32 %v1043_v13, %v280_v45 }
  0xcd   : > { %v215_v28 = vmul.f32 %v1034_v9, %v1043_v13 }
  0xce   : > { %v253_v38 = vmul.f32 %v742_v34, %v1039_v12  ;;  %v251_v46 = vmul.f32 %v741_v42, %v1048_v14  ;;  %v247_v48 = vsel %vm246_vm8, %v741_v42, %v742_v34 }
  0xcf   : > { %v252_v49 = vmul.f32 %v1043_v13, %v247_v48  ;;  %v393_v51 = vpop.permute.xlu0 %392  ;;  %v312_v53 = vpop.permute.xlu1 %311 }
  0xd0   : > { %344 = vrot.lane.b32.xlu1 %v336_v30, %s877_s23  ;;  %425 = vrot.lane.b32.xlu0 %v417_v31, %s878_s24  ;;  %v398_v4 = vsel %vm396_vm10, %v393_v51, %v395_v50  ;;  %v214_v31 = vmul.f32 %v1032_v8, %v1048_v14 }
  0xd3   : > { %v391_v52 = vpop.permute.xlu0 %390  ;;  %v310_v55 = vpop.permute.xlu1 %309 }
  0xd4   : > { %294 = vrot.lane.b32.xlu1 %v286_v35, %s880_s26  ;;  %375 = vrot.lane.b32.xlu0 %v367_v36, %s879_s25  ;;  %v397_v7 = vsel %vm396_vm10, %v391_v52, %v393_v51  ;;  %v316_v19 = vsel %vm315_vm13, %v310_v55, %v312_v53 }
  0xd7   : > { %v314_v54 = vpop.permute.xlu0 %313 }
  0xd8   : > { %423 = vrot.lane.b32.xlu1 %v416_v39, %s878_s24  ;;  %261 = vrot.lane.b32.xlu0 %v253_v38, %s881_s27  ;;  %v317_v18 = vsel %vm315_vm13, %v312_v53, %v314_v54 }
  0xdc   : > { %373 = vrot.lane.b32.xlu1 %v366_v43, %s879_s25  ;;  %342 = vrot.lane.b32.xlu0 %v335_v44, %s877_s23 }
  0xe0   : > { %292 = vrot.lane.b32.xlu0 %v285_v47, %s880_s26  ;;  %257 = vrot.lane.b32.xlu1 %v251_v46, %s881_s27 }
  0xe4   : > { %259 = vrot.lane.b32.xlu1 %v252_v49, %s881_s27  ;;  %226 = vrot.lane.b32.xlu0 %v1043_v13, %s882_s30 }
  0xe8   : > { %228 = vrot.lane.b32.xlu1 %v1039_v12, %s882_s30  ;;  %224 = vrot.lane.b32.xlu0 %v1048_v14, %s882_s30 }
 0x13a   : > { %v341_v56 = vpop.permute.xlu0 %340  ;;  %v422_v57 = vpop.permute.xlu1 %421 }
 0x13e   : > { %v372_v58 = vpop.permute.xlu1 %371  ;;  %v291_v59 = vpop.permute.xlu0 %290 }
 0x142   : > { %v345_v60 = vpop.permute.xlu1 %344  ;;  %v426_v61 = vpop.permute.xlu0 %425 }
 0x146   : > { %v295_v62 = vpop.permute.xlu1 %294  ;;  %v376_v63 = vpop.permute.xlu0 %375 }
 0x14a   : > { %v424_v0 = vpop.permute.xlu1 %423  ;;  %v262_v1 = vpop.permute.xlu0 %261 }
 0x14b   : > { %v429_v2 = vsel %vm427_vm9, %v424_v0, %v426_v61  ;;  %v428_v3 = vsel %vm427_vm9, %v422_v57, %v424_v0 }
 0x14c   : > { %471 = vmatprep.subr.mxu0 %v429_v2 }
 0x14d   : > { %472 = vmatpush1.msra.mxu0 %v428_v3 }
 0x14e   : > { %v374_v5 = vpop.permute.xlu1 %373  ;;  %473 = vmatprep.subr.mxu0 %v398_v4  ;;  %v343_v6 = vpop.permute.xlu0 %342 }
 0x14f   : > { %474 = vmatpush1.msra.mxu0 %v397_v7  ;;  %v379_v10 = vsel %vm377_vm11, %v374_v5, %v376_v63  ;;  %v378_v11 = vsel %vm377_vm11, %v372_v58, %v374_v5  ;;  %v348_v12 = vsel %vm346_vm12, %v343_v6, %v345_v60  ;;  %v347_v17 = vsel %vm346_vm12, %v341_v56, %v343_v6 }
 0x150   : > { %475 = vmatprep.subr.mxu0 %v379_v10 }
 0x151   : > { %476 = vmatpush1.msra.mxu0 %v378_v11 }
 0x152   : > { %477 = vmatprep.subr.mxu0 %v348_v12  ;;  %v293_v15 = vpop.permute.xlu0 %292  ;;  %v258_v16 = vpop.permute.xlu1 %257 }
 0x153   : > { %478 = vmatpush1.msra.mxu0 %v347_v17  ;;  %v298_v20 = vsel %vm296_vm14, %v293_v15, %v295_v62  ;;  %v297_v23 = vsel %vm296_vm14, %v291_v59, %v293_v15 }
 0x154   : > { %479 = vmatprep.subr.mxu0 %v317_v18 }
 0x155   : > { %480 = vmatpush1.msra.mxu0 %v316_v19 }
 0x156   : > { %481 = vmatprep.subr.mxu0 %v298_v20  ;;  %v260_v21 = vpop.permute.xlu1 %259  ;;  %v227_v22 = vpop.permute.xlu0 %226 }
 0x157   : > { %482 = vmatpush1.msra.mxu0 %v297_v23  ;;  %v265_v24 = vsel %vm263_vm15, %v260_v21, %v262_v1  ;;  %v264_v25 = vsel %vm263_vm15, %v258_v16, %v260_v21 }
 0x158   : > { %483 = vmatprep.subr.mxu0 %v265_v24 }
 0x159   : > { %484 = vmatpush1.msra.mxu0 %v264_v25 }
 0x15a   : > { %v229_v26 = vpop.permute.xlu1 %228  ;;  %v225_v27 = vpop.permute.xlu0 %224 }
 0x15b   : > { %v232_v29 = vsel %vm230_vm0, %v227_v22, %v229_v26  ;;  %v231_v30 = vsel %vm230_vm0, %v225_v27, %v227_v22 }
 0x15c   : > { %485 = vmatprep.subr.mxu0 %v232_v29 }
 0x15d   : > { %486 = vmatpush1.msra.mxu0 %v231_v30 }
 0x15e   : > { %487 = vmatprep.subr.mxu0 %v215_v28 }
 0x15f   : > { %488 = vmatpush1.msra.mxu0 %v214_v31 }
 0x160   : > { %637 = vmatmul.mubr.msk.f32.vlgmr.msra.gmra.mxu0 %vm453_vm1, %v434_v32 }
 0x220   : > { %v523_v33 = vpop.f32.mrf.mxu0 }
 0x221   : > { %528 = vst [vmem:[%s172_s4] sm:$0xff] %v523_v33 }
 0x222   : > { %v525_v8 = vpop.f32.mrf.mxu0 }
 0x223   : > { %529 = vst [vmem:[%s172_s4 + $0x8] sm:$0xff] %v525_v8 }
 0x224   : > { %810 = shalt.err (!%p807_p3)
}
 0x225   : > { %s811_s22 = scalar_lea.hbm %s543_s17, 256  ;;  %s815_s24 = scalar_lea.hbm %s1128_s2, 512 }
 0x226   : > { %p812_p11 = scmp.ne.s32.totalorder %s543_s17, %s811_s22  ;;  %p816_p6 = scmp.lt.s32.totalorder %s543_s17, %s1128_s2 }
 0x227   : > { %p817_p4 = scmp.lt.s32.totalorder %s815_s24, %s811_s22 }
 0x228   : > { %p813_p13 = pnand %p812_p11, %p1145_p5 }
 0x229   : > { %p818_p8 = por %p817_p4, %p816_p6 }
 0x22a   : > { %p814_p7 = pneg %p813_p13 }
 0x22c   : > { %p819_p9 = pnand %p818_p8, %p814_p7 }
 0x22e   : > { %822 = shalt.err (!%p819_p9)
}
 0x22f   : > { %653 = dma.vmem_to_hbm [thread:$0]  (%p1145_p5), %s1086_s7, 256, %s543_s17, %s531_s5  }
 0x230 PF: > { %s557_s27 = sand.u32 1, %s853_s9   ;;  %p1146_p12 = scmp.ne.s32.totalorder %s1134_s16, 0 }
 0x231   : > { %p1147_p10 = scmp.ge.s32.totalorder %s865_s12, 2  ;;  %s558_s30 = scalar_lea.sflag [#allocation5], %s557_s27 }
 0x233   : > { %p664_p1 = pnand %p1147_p10, %p1146_p12 }
 0x235   : > { %p665_p2 = pneg %p664_p1 }
 0x237   : > { %848 = dma.done.wait (%p665_p2), %s558_s30, 256  }
 0x238   : > { %850 = vsyncadd (%p665_p2), %s558_s30, 4294967040  ;;  %p16_p0 = scmp.ge.s32.totalorder %s947_s20, 4   ;;  %s1148_s9 = smov %s857_s10 }
 0x239   : > { %s1149_s10 = smov %s861_s11  ;;  %s1150_s11 = smov %s974_s28 }
 0x23a   : > { %s1151_s12 = smov %s947_s20  ;;  %18 = sbr.rel (!%p16_p0) target bundleno = 6 (0x6), region = 77 }
 0x23f   :  { %563 = vsyncpa [#allocation4], 1 }
 0x240   :  { %565 = vsyncpa [#allocation4 + $0x1], 1 }
 0x241   :  { %566 = vsyncpa [#allocation7], 1 }
 0x242   :  { %567 = vsyncpa [#allocation5], 1 }
 0x243   :  { %569 = vsyncpa [#allocation5 + $0x1], 1 }

</bundles_post_ra>
